<compile_context>
chip_gen: v5e
topology: v5e:2x2
jax: 0.10.0
libtpu: 0.0.40
codegen_flags: <defaults>
</compile_context>

<pallas_src>
import numpy as np
import jax
import jax.numpy as jnp
from jax import lax
from jax.experimental import pallas as pl
from jax.experimental.pallas import tpu as pltpu

BN_EPS = 1e-5


def _round_up(x, m):
    return ((x + m - 1) // m) * m


def quant_graph_conv_forward(node, features, edges, w, gamma, beta,
                             *, edge_tile=512, seg_tile=32, bn_eps=BN_EPS):
    """QuantGraphConv.forward: Linear(bias=False) -> BatchNorm1d(train) -> segment amax.

    node [N,3] f32, features [N,Cin] f32, edges [E,2] i32, w [Dout, Cin+3] (torch
    nn.Linear layout), gamma/beta [Dout].  Returns [U, Dout] f32.
    """
    node = jnp.asarray(node, jnp.float32)
    features = jnp.asarray(features, jnp.float32)
    w = jnp.asarray(w, jnp.float32)
    gamma = jnp.asarray(gamma, jnp.float32)
    beta = jnp.asarray(beta, jnp.float32)

    edges_np = np.asarray(edges)
    dst_np = edges_np[:, 0].astype(np.int64)
    src_np = edges_np[:, 1].astype(np.int64)
    E = int(edges_np.shape[0])
    N = int(node.shape[0])
    CIN = int(features.shape[1])
    DIN = CIN + 3
    DIN_PAD = _round_up(DIN + 1, 8)          # +1 ones column, sublane aligned
    DOUT = int(w.shape[0])
    DOUT_PAD = _round_up(DOUT, 128)          # lane-dense output channels
    TE = int(edge_tile)                      # edge rows per block (multiple of 8)
    TU = int(seg_tile)                       # output segments per tile (multiple of 8)
    NC = 2                                   # stats-pass core split (2 TCs on v7x)

    # ---------------- glue: sort edges by destination + segment offsets -----------
    # TODO(synk): torch.unique / the segment-offset and block tables are data-dependent
    # graph preprocessing with no in-kernel Pallas equivalent; computed on host
    # (cacheable per graph so repeated forwards do not redo it or recompile).
    order_np = np.argsort(dst_np, kind="stable")
    dst_sorted_np = dst_np[order_np]

    E_pad = _round_up(max(E, TE), TE * NC)
    total_blocks = E_pad // TE
    bpc = total_blocks // NC
    n_rows = _round_up(N + 1, TU)            # >= N+1 so padded edges land on a dropped row
    sentinel = n_rows - 1
    num_u_tiles = n_rows // TU

    dst_pad_np = np.concatenate(
        [dst_sorted_np, np.full((E_pad - E,), sentinel, dtype=np.int64)])
    seg_starts_np = np.searchsorted(
        dst_pad_np, np.arange(n_rows + 1), side="left").astype(np.int32)

    tile_ids = np.arange(num_u_tiles)
    row_start = seg_starts_np[tile_ids * TU].astype(np.int64)
    row_end = seg_starts_np[(tile_ids + 1) * TU].astype(np.int64)
    blk_start = row_start // TE
    nblk_np = np.where(row_end > row_start,
                       (row_end - 1) // TE - blk_start + 1, 0).astype(np.int32)
    # Bucket NEB to a power of two so similar graphs reuse the compiled kernel.
    NEB = int(pl.next_power_of_2(int(max(1, nblk_np.max()))))
    # Pad each tile's block row by repeating its LAST VALID block id: unchanged block
    # index across padded (t, e) steps lets Pallas elide the redundant DMA.
    last_valid = np.where(nblk_np > 0, blk_start + nblk_np - 1,
                          np.minimum(blk_start, total_blocks - 1))
    blk_tbl_np = np.minimum(blk_start[:, None] + np.arange(NEB)[None, :],
                            last_valid[:, None])
    blk_tbl_np = np.clip(blk_tbl_np, 0, total_blocks - 1).astype(np.int32).reshape(-1)

    # ------------- glue: fused message build, already in sorted order -------------
    src_s = jnp.asarray(src_np[order_np], jnp.int32)
    dst_s = jnp.asarray(dst_sorted_np, jnp.int32)
    msg_core = jnp.concatenate(
        [features[src_s], node[src_s] - node[dst_s],
         jnp.ones((E, 1), jnp.float32)], axis=1)                        # [E, DIN+1]
    msg_pad = jnp.zeros((E_pad, DIN_PAD), jnp.float32).at[:E, :DIN + 1].set(msg_core)

    # ---------------- params, padded to lane-dense DOUT_PAD ------------------------
    w_pad = jnp.zeros((DIN_PAD, DOUT_PAD), jnp.float32).at[:DIN, :DOUT].set(w.T)
    gamma_pad = jnp.zeros((1, DOUT_PAD), jnp.float32).at[0, :DOUT].set(gamma)
    beta_pad = jnp.zeros((1, DOUT_PAD), jnp.float32).at[0, :DOUT].set(beta)

    # ========= kernel 1: augmented Gram (BN stats) via one MXU op per block =========
    def stats_kernel(msg_ref, gram_ref):
        @pl.when(pl.program_id(1) == 0)
        def _init():
            gram_ref[...] = jnp.zeros_like(gram_ref)

        m = msg_ref[...]                                           # [TE, DIN_PAD]
        # m^T m on the MXU (contracting the edge-row axis); the ones column makes the
        # same dot also produce sum(msg) (row DIN) and the edge count (corner).
        gram_ref[...] += lax.dot_general(
            m, m, (((0,), (0,)), ((), ())), preferred_element_type=jnp.float32)

    gram_parts = pl.pallas_call(
        stats_kernel,
        out_shape=jax.ShapeDtypeStruct((NC, DIN_PAD, DIN_PAD), jnp.float32),
        grid=(NC, bpc),
        in_specs=[pl.BlockSpec((TE, DIN_PAD), lambda c, i: (c * bpc + i, 0))],
        out_specs=pl.BlockSpec((None, DIN_PAD, DIN_PAD), lambda c, i: (c, 0, 0)),
        compiler_params=pltpu.CompilerParams(
            dimension_semantics=("parallel", "arbitrary")),
    )(msg_pad)
    gram_aug = jnp.sum(gram_parts, axis=0)                          # [DIN_PAD, DIN_PAD]

    # Finalize BN (training mode, biased variance) and fold it into the weights.
    # NOTE: E[x^2] - E[x]^2 in f32 can cancel for |mean| >> std; acceptable at the 1e-4
    # tolerance here (consider a compensated/centered accumulation for extreme scales).
    inv_e = jnp.float32(1.0 / E)                                    # padded rows are 0
    sum_row = gram_aug[DIN:DIN + 1, :]                              # ones row: [sum(msg), E, 0..]
    mean_lin = (sum_row * inv_e) @ w_pad                            # [1, DOUT_PAD]
    ex2 = jnp.sum(w_pad * ((gram_aug * inv_e) @ w_pad), axis=0, keepdims=True)
    var = jnp.maximum(ex2 - mean_lin * mean_lin, 0.0)
    scale = gamma_pad * lax.rsqrt(var + bn_eps)                     # [1, DOUT_PAD]
    shift = beta_pad - mean_lin * scale
    w_scaled = w_pad * scale      # fold BEFORE the matmul (exact sign handling for gamma<0)
    # shift is hoisted PAST the segment max (max(y)+shift == max(y+shift)) and applied
    # once to the pooled result in the wrapper.

    # ===== kernel 2: Linear(+folded BN scale) + sorted-segment max (scalar prefetch) =====
    def pool_kernel(seg_starts_ref, blk_tbl_ref, nblk_ref,
                    msg_ref, w_ref, out_ref):
        t = pl.program_id(0)                  # output (segment) tile   -- "parallel"
        e = pl.program_id(1)                  # edge block within tile  -- "arbitrary"

        @pl.when(e == 0)
        def _init():
            out_ref[...] = jnp.full(out_ref.shape, -jnp.inf, dtype=out_ref.dtype)

        @pl.when(e < nblk_ref[t])
        def _accumulate():
            m = msg_ref[...]                                               # [TE, DIN_PAD]
            y = jnp.dot(m, w_ref[...], preferred_element_type=jnp.float32)  # [TE, DOUT_PAD]

            blk = blk_tbl_ref[t * NEB + e]
            rows = blk * TE + lax.broadcasted_iota(jnp.int32, (TE, 1), 0)
            base = t * TU
            bounds = [seg_starts_ref[base + l] for l in range(TU + 1)]     # SMEM scalars
            contribs = []
            for l in range(TU):               # static unroll over segments in the tile
                in_seg = jnp.logical_and(rows >= bounds[l], rows < bounds[l + 1])
                contribs.append(jnp.max(jnp.where(in_seg, y, -jnp.inf),
                                        axis=0, keepdims=True))            # [1, DOUT_PAD]
            contrib_all = jnp.concatenate(contribs, axis=0)                # [TU, DOUT_PAD]
            # single unmasked read-modify-write of the resident output tile per block
            out_ref[...] = jnp.maximum(out_ref[...], contrib_all)

    grid_spec = pltpu.PrefetchScalarGridSpec(
        num_scalar_prefetch=3,
        grid=(num_u_tiles, NEB),
        in_specs=[
            pl.BlockSpec((TE, DIN_PAD), lambda t, e, ss, bt, nb: (bt[t * NEB + e], 0)),
            pl.BlockSpec((DIN_PAD, DOUT_PAD), lambda t, e, ss, bt, nb: (0, 0)),
        ],
        out_specs=pl.BlockSpec((TU, DOUT_PAD), lambda t, e, ss, bt, nb: (t, 0)),
    )
    pooled_pad = pl.pallas_call(
        pool_kernel,
        out_shape=jax.ShapeDtypeStruct((n_rows, DOUT_PAD), jnp.float32),
        grid_spec=grid_spec,
        compiler_params=pltpu.CompilerParams(
            dimension_semantics=("parallel", "arbitrary")),
    )(jnp.asarray(seg_starts_np), jnp.asarray(blk_tbl_np), jnp.asarray(nblk_np),
      msg_pad, w_scaled)

    # -------- glue: compact padded [n_rows, DOUT_PAD] to torch's [U, Dout] + shift ----
    uniq_np = np.unique(dst_np)               # sorted unique destinations (host glue)
    return pooled_pad[jnp.asarray(uniq_np, jnp.int32), :DOUT] + shift[:, :DOUT]


def _reference(node, features, edges, w, gamma, beta, bn_eps=BN_EPS):
    """Pure-JAX reference matching the torch forward (training-mode BatchNorm)."""
    node = jnp.asarray(node, jnp.float32)
    features = jnp.asarray(features, jnp.float32)
    edges_np = np.asarray(edges)
    dst = jnp.asarray(edges_np[:, 0], jnp.int32)
    src = jnp.asarray(edges_np[:, 1], jnp.int32)
    msg = jnp.concatenate([features[src], node[src] - node[dst]], axis=1)
    lin = msg @ jnp.asarray(w, jnp.float32).T
    mean = lin.mean(axis=0, keepdims=True)
    var = ((lin - mean) ** 2).mean(axis=0, keepdims=True)          # biased variance
    y = (lin - mean) * lax.rsqrt(var + bn_eps)
    y = y * jnp.asarray(gamma).reshape(1, -1) + jnp.asarray(beta).reshape(1, -1)
    segmax = jax.ops.segment_max(y, dst, num_segments=int(node.shape[0]))
    uniq = np.unique(edges_np[:, 0])
    return segmax[jnp.asarray(uniq, jnp.int32), :]


if __name__ == "__main__":
    key = jax.random.PRNGKey(0)
    k_node, k_feat, k_edge, k_w = jax.random.split(key, 4)

    # Small point-cloud-style graph consistent with QuantGraphConv(input_dim=1, output_dim=4).
    N, E = 64, 500
    input_dim, output_dim = 1, 4

    node = jax.random.normal(k_node, (N, 3), dtype=jnp.float32)
    features = jax.random.normal(k_feat, (N, input_dim), dtype=jnp.float32)
    edges = jax.random.randint(k_edge, (E, 2), 0, N, dtype=jnp.int32)

    din = input_dim + 3
    bound = 1.0 / np.sqrt(din)
    w = jax.random.uniform(k_w, (output_dim, din), minval=-bound, maxval=bound,
                           dtype=jnp.float32)          # torch nn.Linear layout [out, in]
    gamma = jnp.ones((output_dim,), jnp.float32)       # BatchNorm1d.weight init
    beta = jnp.zeros((output_dim,), jnp.float32)       # BatchNorm1d.bias init

    out = quant_graph_conv_forward(node, features, edges, w, gamma, beta)
    out = jax.block_until_ready(out)

    ref = _reference(node, features, edges, w, gamma, beta)
    assert out.shape == ref.shape, (out.shape, ref.shape)
    np.testing.assert_allclose(np.asarray(out), np.asarray(ref), rtol=1e-4, atol=1e-4)
    print("KERNEL_OK")
</pallas_src>

<mosaic_0001>
module attributes {stable_mosaic.version = 11 : i64} {
  func.func @stats_kernel(%arg0: i32, %arg1: i32, %arg2: memref<512x8xf32, #tpu.memory_space<vmem>>, %arg3: memref<1x8x8xf32, #tpu.memory_space<vmem>>) attributes {dimension_semantics = [#tpu.dimension_semantics<parallel>, #tpu.dimension_semantics<arbitrary>], iteration_bounds = array<i64: 2, 1>, scalar_prefetch = 0 : i64, scratch_operands = 0 : i64, tpu.core_type = #tpu.core_type<tc>, window_params = [{transform_indices = @transform_0, window_bounds = array<i64: 512, 8>}, {transform_indices = @transform_1, window_bounds = array<i64: 1, 8, 8>}]} {
    %c0_i32 = arith.constant 0 : i32
    %0 = arith.cmpi eq, %arg1, %c0_i32 : i32
    %1 = arith.extui %0 : i1 to i32
    %c0_i32_0 = arith.constant 0 : i32
    %2 = arith.cmpi ne, %1, %c0_i32_0 : i32
    scf.if %2 {
      %cst_8 = arith.constant 0.000000e+00 : f32
      %11 = vector.broadcast %cst_8 : f32 to vector<8x8xf32>
      %c0_9 = arith.constant 0 : index
      %c0_10 = arith.constant 0 : index
      %c0_11 = arith.constant 0 : index
      %12 = vector.load %arg3[%c0_9, %c0_10, %c0_11] : memref<1x8x8xf32, #tpu.memory_space<vmem>>, vector<1x8x8xf32>
      %13 = vector.shape_cast %12 : vector<1x8x8xf32> to vector<8x8xf32>
      %14 = vector.shape_cast %11 : vector<8x8xf32> to vector<1x8x8xf32>
      tpu.vector_store %arg3[%c0_9, %c0_10, %c0_11], %14 {strides = array<i32>} : memref<1x8x8xf32, #tpu.memory_space<vmem>>, vector<1x8x8xf32>,
    } else {
    }
    %c0 = arith.constant 0 : index
    %c0_1 = arith.constant 0 : index
    %3 = vector.load %arg2[%c0, %c0_1] : memref<512x8xf32, #tpu.memory_space<vmem>>, vector<512x8xf32>
    %c0_2 = arith.constant 0 : index
    %c0_3 = arith.constant 0 : index
    %c0_4 = arith.constant 0 : index
    %4 = vector.load %arg3[%c0_2, %c0_3, %c0_4] : memref<1x8x8xf32, #tpu.memory_space<vmem>>, vector<1x8x8xf32>
    %5 = vector.shape_cast %4 : vector<1x8x8xf32> to vector<8x8xf32>
    %cst = arith.constant dense<0.000000e+00> : vector<8x8xf32>
    %6 = tpu.matmul %3, %3, %cst {dimension_numbers = #tpu.dot_dimension_numbers<[0], [0], [1], [1], [0, 1, 1, 1], [], []>} : vector<512x8xf32>, vector<512x8xf32>, vector<8x8xf32> -> vector<8x8xf32>
    %7 = arith.addf %5, %6 : vector<8x8xf32>
    %c0_5 = arith.constant 0 : index
    %c0_6 = arith.constant 0 : index
    %c0_7 = arith.constant 0 : index
    %8 = vector.load %arg3[%c0_5, %c0_6, %c0_7] : memref<1x8x8xf32, #tpu.memory_space<vmem>>, vector<1x8x8xf32>
    %9 = vector.shape_cast %8 : vector<1x8x8xf32> to vector<8x8xf32>
    %10 = vector.shape_cast %7 : vector<8x8xf32> to vector<1x8x8xf32>
    tpu.vector_store %arg3[%c0_5, %c0_6, %c0_7], %10 {strides = array<i32>} : memref<1x8x8xf32, #tpu.memory_space<vmem>>, vector<1x8x8xf32>,
    return
  }
  func.func @transform_0(%arg0: i32, %arg1: i32) -> (i32, i32) {
    %c1_i32 = arith.constant 1 : i32
    %0 = arith.muli %arg0, %c1_i32 : i32
    %1 = arith.addi %0, %arg1 : i32
    %c0_i32 = arith.constant 0 : i32
    %c0_i32_0 = arith.constant 0 : i32
    return %1, %c0_i32 : i32, i32
  }
  func.func @transform_1(%arg0: i32, %arg1: i32) -> (i32, i32, i32) {
    %c0_i32 = arith.constant 0 : i32
    %c0_i32_0 = arith.constant 0 : i32
    %c0_i32_1 = arith.constant 0 : i32
    return %arg0, %c0_i32, %c0_i32_0 : i32, i32, i32
  }
}

</mosaic_0001>

<bundles_post_ra>
// kernel: tpu_custom_call.1
= control target key start
LH: loop header
LB: loop body
LE: loop exit
PB: predicated region body
PF: predicated region fallthrough
CT: control target
= control target key end

     0   :  { %6 = vsyncpa [#allocation3], 0  ;;  %s1090_s0 = inlined_call_operand.vmem [shape: f32[1024,8], index: 0, kind: input, shape index: {}]   ;;  %s1091_s1 = inlined_call_operand.hbm [shape: f32[2,8,8], index: 1, kind: output, shape index: {}]  }
   0x1   :  { %8 = vsyncpa [#allocation3 + $0x1], 0  ;;  %s746_s6 = smov 0   ;;  %s748_s7 = smov 0  }
   0x2   :  { %s750_s8 = smov 0   ;;  %s752_s9 = smov 0  }
   0x3   :  { %s754_s10 = smov 0   ;;  %s756_s11 = smov 0  }
   0x4 LB: > { %s501_s12 = sadd.s32 4294967295, %s733_s11   ;;  %s502_s13 = sadd.s32 4294967294, %s733_s11   ;;  %s733_s11 = sphi %s756_s11, %s14_s11   ;;  %s729_s10 = sphi %s754_s10, %s1110_s10   ;;  %s725_s9 = sphi %s752_s9, %s1109_s9   ;;  %s721_s8 = sphi %s750_s8, %s1108_s8   ;;  %s717_s7 = sphi %s748_s7, %s1107_s7   ;;  %s713_s6 = sphi %s746_s6, %s1106_s6  }
   0x5   : > { %s26_s14 = sadd.s32 1, %s729_s10  ;;  %s61_s15 = sadd.s32 1, %s721_s8 }
   0x6   : > { %p28_p0 = scmp.ge.s32.totalorder %s26_s14, 2  ;;  %p71_p1 = scmp.ne.s32.totalorder %s721_s8, %s717_s7 }
   0x7   : > { %p72_p2 = scmp.eq.s32.totalorder %s501_s12, 1  ;;  %p77_p3 = scmp.ne.s32.totalorder %s717_s7, %s713_s6 }
   0x8   : > { %s1112_s14 = smov (%p28_p0, %s26_s14), 0  ;;  %p78_p5 = scmp.eq.s32.totalorder %s502_s13, 1 }
   0x9   : > { %p786_p4 = por %p72_p2, %p71_p1  ;;  %s58_s17 = ssub.s32 %s729_s10, %s1112_s14 }
   0xa   : > { %p505_p6 = scmp.ge.s32.totalorder %s733_s11, 1  ;;  %p59_p7 = scmp.eq.s32.totalorder %s58_s17, 0 }
   0xb   : > { %p793_p8 = por %p78_p5, %p77_p3  ;;  %p107_p9 = scmp.lt.s32.totalorder %s733_s11, 3 }
   0xc   : > { %s799_s19 = scalar_select %p59_p7, %s721_s8, %s61_s15  }
   0xd   : > { %p108_p10 = pnand %p505_p6, %p107_p9 }
   0xf   : > { %111 = sbr.rel (%p108_p10) target bundleno = 340 (0x154), region = 24 }
  0x14   : > { %s507_s20 = sshll.u32 %s725_s9, 6  ;;  %s125_s25 = sand.u32 1, %s717_s7   ;;  %vm140_vm0 = vcmask 64512  }
  0x15   : > { %p130_p11 = scmp.lt.s32.totalorder %s507_s20, 127  ;;  %s506_s26 = sshll.u32 %s125_s25, 3 }
  0x16   : > { %s127_s27 = scalar_lea.vmem [#allocation2], %s506_s26  ;;  %s510_s28 = sshll.u32 %s725_s9, 3 }
  0x17   : > { %s1114_s20 = smov (!%p130_p11, %s507_s20), 127  ;;  %s429_s2 = scalar_lea.hbm %s1091_s1, %s510_s28 }
  0x18   : > { %s508_s21 = sshll.u32 %s1114_s20, 3  ;;  %s431_s3 = sshll.u32 %s127_s27, 4  ;;  %s432_s3 = int_to_ptr.vmem [resolvable:$true] %s431_s3 }
  0x19   : > { %s805_s24 = scalar_lea.vmem %s1090_s0, %s508_s21  ;;  %s433_s4 = sshll.u32 %s429_s2, 4  ;;  %s434_s4 = int_to_ptr.hbm [resolvable:$true] %s433_s4 }
  0x1a   : > { %v808_v0 = vld [vmem:[%s805_s24 + $0x80] sm:$0xff]  ;;  %v824_v6 = vld [vmem:[%s805_s24 + $0x88] sm:$0xff]  ;;  %v840_v12 = vld [vmem:[%s805_s24 + $0x90] sm:$0xff]  ;;  %s419_s5 = scalar_lea.sflag [#allocation3], %s125_s25  ;;  %s669_s9 = sshra.s32 %s434_s4, 4  ;;  %s670_s9 = int_to_ptr.hbm [resolvable:$true] %s669_s9 }
  0x1b   : > { %1098 = vst [vmem:[#allocation5_spill] sm:$0xff] %v808_v0  ;;  %v811_v1 = vld [vmem:[%s805_s24 + $0x180] sm:$0xff]  ;;  %v827_v7 = vld [vmem:[%s805_s24 + $0x188] sm:$0xff]  ;;  %v843_v13 = vld [vmem:[%s805_s24 + $0x190] sm:$0xff]  ;;  %s671_s12 = scalar_lea.hbm %s670_s9, 8  ;;  %s675_s17 = scalar_lea.hbm %s1091_s1, 16 }
  0x1c   : > { %1099 = vst [vmem:[#allocation6_spill] sm:$0xff] %v811_v1  ;;  %v814_v2 = vld [vmem:[%s805_s24] sm:$0xff]  ;;  %v618_v3 = vpack.i.bf16 %v808_v0, %v811_v1  ;;  %v830_v8 = vld [vmem:[%s805_s24 + $0x8] sm:$0xff]  ;;  %v620_v10 = vpack.i.bf16 %v824_v6, %v827_v7  ;;  %v846_v14 = vld [vmem:[%s805_s24 + $0x10] sm:$0xff]  ;;  %v622_v16 = vpack.i.bf16 %v840_v12, %v843_v13  ;;  %p672_p12 = scmp.ne.s32.totalorder %s670_s9, %s671_s12  ;;  %p676_p1 = scmp.lt.s32.totalorder %s670_s9, %s1091_s1 }
  0x1d   : > { %v819_v4 = vld [vmem:[%s805_s24 + $0x100] sm:$0xff]  ;;  %1101 = vst [vmem:[#allocation8_spill] sm:$0xff] %v827_v7  ;;  %v833_v9 = vld [vmem:[%s805_s24 + $0x108] sm:$0xff]  ;;  %v849_v15 = vld [vmem:[%s805_s24 + $0x110] sm:$0xff]  ;;  %p677_p2 = scmp.lt.s32.totalorder %s675_s17, %s671_s12 }
  0x1e   : > { %1100 = vst [vmem:[#allocation7_spill] sm:$0xff] %v819_v4  ;;  %v581_v5 = vpack.i.bf16 %v819_v4, %v814_v2  ;;  %619 = vxpose.xlu1.b32.start [1/16] (narrow) %v618_v3, 8  ;;  %v583_v11 = vpack.i.bf16 %v833_v9, %v830_v8  ;;  %v585_v17 = vpack.i.bf16 %v849_v15, %v846_v14  ;;  %v856_v18 = vld [vmem:[%s805_s24 + $0x98] sm:$0xff]  ;;  %v872_v24 = vld [vmem:[%s805_s24 + $0xa0] sm:$0xff]  ;;  %v888_v30 = vld [vmem:[%s805_s24 + $0xa8] sm:$0xff]  ;;  %p673_p13 = pnand %p672_p12, %p786_p4 }
  0x1f   : > { %v859_v19 = vld [vmem:[%s805_s24 + $0x198] sm:$0xff]  ;;  %v875_v25 = vld [vmem:[%s805_s24 + $0x1a0] sm:$0xff]  ;;  %v891_v31 = vld [vmem:[%s805_s24 + $0x1a8] sm:$0xff]  ;;  %p678_p3 = por %p677_p2, %p676_p1 }
  0x20   : > { %582 = vxpose.xlu0.b32.start [1/16] (narrow) %v581_v5, 8  ;;  %v862_v20 = vld [vmem:[%s805_s24 + $0x18] sm:$0xff]  ;;  %v624_v22 = vpack.i.bf16 %v856_v18, %v859_v19  ;;  %v878_v26 = vld [vmem:[%s805_s24 + $0x20] sm:$0xff]  ;;  %v626_v28 = vpack.i.bf16 %v872_v24, %v875_v25  ;;  %v894_v32 = vld [vmem:[%s805_s24 + $0x28] sm:$0xff]  ;;  %v628_v34 = vpack.i.bf16 %v888_v30, %v891_v31  ;;  %p674_p0 = pneg %p673_p13 }
  0x21   : > { %v865_v21 = vld [vmem:[%s805_s24 + $0x118] sm:$0xff]  ;;  %v881_v27 = vld [vmem:[%s805_s24 + $0x120] sm:$0xff]  ;;  %v897_v33 = vld [vmem:[%s805_s24 + $0x128] sm:$0xff] }
  0x22   : > { %v587_v23 = vpack.i.bf16 %v865_v21, %v862_v20  ;;  %v589_v29 = vpack.i.bf16 %v881_v27, %v878_v26  ;;  %v591_v35 = vpack.i.bf16 %v897_v33, %v894_v32  ;;  %v904_v36 = vld [vmem:[%s805_s24 + $0xb0] sm:$0xff]  ;;  %v920_v42 = vld [vmem:[%s805_s24 + $0xb8] sm:$0xff]  ;;  %v936_v48 = vld [vmem:[%s805_s24 + $0xc0] sm:$0xff]  ;;  %p679_p5 = pnand %p678_p3, %p674_p0 }
  0x23   : > { %v907_v37 = vld [vmem:[%s805_s24 + $0x1b0] sm:$0xff]  ;;  %v923_v43 = vld [vmem:[%s805_s24 + $0x1b8] sm:$0xff]  ;;  %v939_v49 = vld [vmem:[%s805_s24 + $0x1c0] sm:$0xff] }
  0x24   : > { %v910_v38 = vld [vmem:[%s805_s24 + $0x30] sm:$0xff]  ;;  %v630_v40 = vpack.i.bf16 %v904_v36, %v907_v37  ;;  %v926_v44 = vld [vmem:[%s805_s24 + $0x38] sm:$0xff]  ;;  %v632_v46 = vpack.i.bf16 %v920_v42, %v923_v43  ;;  %v942_v50 = vld [vmem:[%s805_s24 + $0x40] sm:$0xff]  ;;  %v634_v52 = vpack.i.bf16 %v936_v48, %v939_v49 }
  0x25   : > { %v913_v39 = vld [vmem:[%s805_s24 + $0x130] sm:$0xff]  ;;  %v929_v45 = vld [vmem:[%s805_s24 + $0x138] sm:$0xff]  ;;  %v945_v51 = vld [vmem:[%s805_s24 + $0x140] sm:$0xff] }
  0x26   : > { %621 = vxpose.xlu1.b32.cont [2/16] (narrow) %v620_v10, 8  ;;  %v593_v41 = vpack.i.bf16 %v913_v39, %v910_v38  ;;  %v595_v47 = vpack.i.bf16 %v929_v45, %v926_v44  ;;  %v597_v53 = vpack.i.bf16 %v945_v51, %v942_v50  ;;  %v167_v54 = vld [vmem:[%s805_s24 + $0xc8] sm:$0xff]  ;;  %v168_v60 = vld [vmem:[%s805_s24 + $0xd0] sm:$0xff]  ;;  %v169_v10 = vld [vmem:[%s805_s24 + $0xd8] sm:$0xff] }
  0x27   : > { %v953_v55 = vld [vmem:[%s805_s24 + $0x1c8] sm:$0xff]  ;;  %v200_v61 = vld [vmem:[%s805_s24 + $0x1d0] sm:$0xff] }
  0x28   : > { %584 = vxpose.xlu0.b32.cont [2/16] (narrow) %v583_v11, 8  ;;  %v956_v56 = vld [vmem:[%s805_s24 + $0x48] sm:$0xff]  ;;  %v636_v58 = vpack.i.bf16 %v167_v54, %v953_v55  ;;  %v152_v62 = vld [vmem:[%s805_s24 + $0x50] sm:$0xff]  ;;  %v638_v3 = vpack.i.bf16 %v168_v60, %v200_v61  ;;  %v201_v11 = vld [vmem:[%s805_s24 + $0x1d8] sm:$0xff] }
  0x29   : > { %v959_v57 = vld [vmem:[%s805_s24 + $0x148] sm:$0xff]  ;;  %v184_v63 = vld [vmem:[%s805_s24 + $0x150] sm:$0xff] }
  0x2a   : > { %v599_v59 = vpack.i.bf16 %v959_v57, %v956_v56  ;;  %v601_v5 = vpack.i.bf16 %v184_v63, %v152_v62  ;;  %v155_v1 = vld [vmem:[%s805_s24 + $0x68] sm:$0xff] }
  0x2b   : > { %v187_v7 = vld [vmem:[%s805_s24 + $0x168] sm:$0xff] }
  0x2e   : > { %623 = vxpose.xlu1.b32.cont [3/16] (narrow) %v622_v16, 8  ;;  %v971_v16 = vld [vmem:[%s805_s24 + $0xf8] sm:$0xff] }
  0x2f   : > { %355 = vmatpush.msra.mxu1 %v971_v16 }
  0x30   : > { %586 = vxpose.xlu0.b32.cont [3/16] (narrow) %v585_v17, 8  ;;  %v974_v17 = vld [vmem:[%s805_s24 + $0x1f8] sm:$0xff] }
  0x31   : > { %395 = vmatpush.msra.mxu3 %v974_v17 }
  0x36   : > { %625 = vxpose.xlu1.b32.cont [4/16] (narrow) %v624_v22, 8  ;;  %v153_v22 = vld [vmem:[%s805_s24 + $0x58] sm:$0xff] }
  0x38   : > { %588 = vxpose.xlu0.b32.cont [4/16] (narrow) %v587_v23, 8  ;;  %v185_v23 = vld [vmem:[%s805_s24 + $0x158] sm:$0xff] }
  0x3e   : > { %627 = vxpose.xlu1.b32.cont [5/16] (narrow) %v626_v28, 8  ;;  %v981_v28 = vld [vmem:[%s805_s24 + $0xf0] sm:$0xff] }
  0x3f   : > { %356 = vmatpush.msra.mxu1 %v981_v28 }
  0x40   : > { %590 = vxpose.xlu0.b32.cont [5/16] (narrow) %v589_v29, 8  ;;  %v984_v29 = vld [vmem:[%s805_s24 + $0x1f0] sm:$0xff] }
  0x41   : > { %396 = vmatpush.msra.mxu3 %v984_v29 }
  0x46   : > { %629 = vxpose.xlu1.b32.cont [6/16] (narrow) %v628_v34, 8  ;;  %v640_v34 = vpack.i.bf16 %v169_v10, %v201_v11 }
  0x48   : > { %592 = vxpose.xlu0.b32.cont [6/16] (narrow) %v591_v35, 8  ;;  %v603_v35 = vpack.i.bf16 %v185_v23, %v153_v22 }
  0x4e   : > { %631 = vxpose.xlu1.b32.cont [7/16] (narrow) %v630_v40, 8  ;;  %v171_v40 = vld [vmem:[%s805_s24 + $0xe8] sm:$0xff] }
  0x4f   : > { %357 = vmatpush.msra.mxu1 %v171_v40 }
  0x50   : > { %594 = vxpose.xlu0.b32.cont [7/16] (narrow) %v593_v41, 8  ;;  %v203_v41 = vld [vmem:[%s805_s24 + $0x1e8] sm:$0xff] }
  0x51   : > { %397 = vmatpush.msra.mxu3 %v203_v41 }
  0x56   : > { %633 = vxpose.xlu1.b32.cont [8/16] (narrow) %v632_v46, 8  ;;  %v991_v46 = vld [vmem:[%s805_s24 + $0x78] sm:$0xff] }
  0x57   : > { %335 = vmatpush.msra.mxu0 %v991_v46 }
  0x58   : > { %596 = vxpose.xlu0.b32.cont [8/16] (narrow) %v595_v47, 8  ;;  %v994_v47 = vld [vmem:[%s805_s24 + $0x178] sm:$0xff] }
  0x59   : > { %375 = vmatpush.msra.mxu2 %v994_v47 }
  0x5e   : > { %635 = vxpose.xlu1.b32.cont [9/16] (narrow) %v634_v52, 8  ;;  %v170_v52 = vld [vmem:[%s805_s24 + $0xe0] sm:$0xff] }
  0x5f   : > { %358 = vmatpush.msra.mxu1 %v170_v52 }
  0x60   : > { %598 = vxpose.xlu0.b32.cont [9/16] (narrow) %v597_v53, 8  ;;  %v156_v53 = vld [vmem:[%s805_s24 + $0x70] sm:$0xff] }
  0x61   : > { %336 = vmatpush.msra.mxu0 %v156_v53  ;;  %359 = vmatpush.msra.mxu1 %v169_v10  ;;  %v644_v10 = vpack.i.bf16 %v171_v40, %v203_v41 }
  0x63   : > { %337 = vmatpush.msra.mxu0 %v155_v1  ;;  %360 = vmatpush.msra.mxu1 %v168_v60  ;;  %v607_v60 = vpack.i.bf16 %v187_v7, %v155_v1 }
  0x65   : > { %361 = vmatpush.msra.mxu1 %v167_v54 }
  0x66   : > { %637 = vxpose.xlu1.b32.cont [10/16] (narrow) %v636_v58, 8  ;;  %v202_v58 = vld [vmem:[%s805_s24 + $0x1e0] sm:$0xff] }
  0x67   : > { %398 = vmatpush.msra.mxu3 %v202_v58  ;;  %v642_v4 = vpack.i.bf16 %v170_v52, %v202_v58  ;;  %362 = vmatpush.msra.mxu1 %v936_v48 }
  0x68   : > { %600 = vxpose.xlu0.b32.cont [10/16] (narrow) %v599_v59, 8  ;;  %v188_v59 = vld [vmem:[%s805_s24 + $0x170] sm:$0xff] }
  0x69   : > { %376 = vmatpush.msra.mxu2 %v188_v59  ;;  %399 = vmatpush.msra.mxu3 %v201_v11  ;;  %v609_v1 = vpack.i.bf16 %v188_v59, %v156_v53 }
  0x6a   : > { %363 = vmatpush.msra.mxu1 %v920_v42 }
  0x6b   : > { %377 = vmatpush.msra.mxu2 %v187_v7  ;;  %400 = vmatpush.msra.mxu3 %v200_v61  ;;  %v611_v7 = vpack.i.bf16 %v994_v47, %v991_v46 }
  0x6c   : > { %364 = vmatpush.msra.mxu1 %v904_v36 }
  0x6d   : > { %401 = vmatpush.msra.mxu3 %v953_v55 }
  0x6e   : > { %639 = vxpose.xlu1.b32.cont [11/16] (narrow) %v638_v3, 8  ;;  %v154_v3 = vld [vmem:[%s805_s24 + $0x60] sm:$0xff]  ;;  %365 = vmatpush.msra.mxu1 %v888_v30 }
  0x6f   : > { %338 = vmatpush.msra.mxu0 %v154_v3  ;;  %402 = vmatpush.msra.mxu3 %v939_v49 }
  0x70   : > { %602 = vxpose.xlu0.b32.cont [11/16] (narrow) %v601_v5, 8  ;;  %v186_v5 = vld [vmem:[%s805_s24 + $0x160] sm:$0xff]  ;;  %366 = vmatpush.msra.mxu1 %v872_v24 }
  0x71   : > { %v605_v0 = vpack.i.bf16 %v186_v5, %v154_v3  ;;  %378 = vmatpush.msra.mxu2 %v186_v5  ;;  %339 = vmatpush.msra.mxu0 %v153_v22 }
  0x72   : > { %403 = vmatpush.msra.mxu3 %v923_v43  ;;  %367 = vmatpush.msra.mxu1 %v856_v18 }
  0x73   : > { %379 = vmatpush.msra.mxu2 %v185_v23  ;;  %340 = vmatpush.msra.mxu0 %v152_v62 }
  0x74   : > { %404 = vmatpush.msra.mxu3 %v907_v37  ;;  %368 = vmatpush.msra.mxu1 %v840_v12  ;;  %v1102_v12 = vld [vmem:[#allocation5_spill] sm:$0xff] }
  0x75   : > { %380 = vmatpush.msra.mxu2 %v184_v63  ;;  %341 = vmatpush.msra.mxu0 %v956_v56 }
  0x76   : > { %641 = vxpose.xlu1.b32.cont [12/16] (narrow) %v640_v34, 8  ;;  %405 = vmatpush.msra.mxu3 %v891_v31 }
  0x77   : > { %381 = vmatpush.msra.mxu2 %v959_v57  ;;  %342 = vmatpush.msra.mxu0 %v942_v50 }
  0x78   : > { %604 = vxpose.xlu0.b32.cont [12/16] (narrow) %v603_v35, 8  ;;  %406 = vmatpush.msra.mxu3 %v875_v25 }
  0x79   : > { %382 = vmatpush.msra.mxu2 %v945_v51  ;;  %343 = vmatpush.msra.mxu0 %v926_v44 }
  0x7a   : > { %407 = vmatpush.msra.mxu3 %v859_v19  ;;  %369 = vmatpush.msra.mxu1 %v824_v6 }
  0x7b   : > { %383 = vmatpush.msra.mxu2 %v929_v45  ;;  %344 = vmatpush.msra.mxu0 %v910_v38 }
  0x7c   : > { %408 = vmatpush.msra.mxu3 %v843_v13  ;;  %370 = vmatpush.msra.mxu1 %v1102_v12 }
  0x7d   : > { %384 = vmatpush.msra.mxu2 %v913_v39  ;;  %345 = vmatpush.msra.mxu0 %v894_v32 }
  0x7e   : > { %643 = vxpose.xlu1.b32.cont [13/16] (narrow) %v642_v4, 8  ;;  %v648_v4 = vpack.i.bf16 %v971_v16, %v974_v17 }
  0x7f   : > { %385 = vmatpush.msra.mxu2 %v897_v33  ;;  %346 = vmatpush.msra.mxu0 %v878_v26 }
  0x80   : > { %606 = vxpose.xlu0.b32.cont [13/16] (narrow) %v605_v0, 8  ;;  %v646_v0 = vpack.i.bf16 %v981_v28, %v984_v29 }
  0x81   : > { %386 = vmatpush.msra.mxu2 %v881_v27  ;;  %347 = vmatpush.msra.mxu0 %v862_v20 }
  0x83   : > { %387 = vmatpush.msra.mxu2 %v865_v21  ;;  %348 = vmatpush.msra.mxu0 %v846_v14  ;;  %v1103_v14 = vld [vmem:[#allocation7_spill] sm:$0xff] }
  0x85   : > { %388 = vmatpush.msra.mxu2 %v849_v15  ;;  %349 = vmatpush.msra.mxu0 %v830_v8  ;;  %v1104_v8 = vld [vmem:[#allocation8_spill] sm:$0xff]  ;;  %v1105_v15 = vld [vmem:[#allocation6_spill] sm:$0xff] }
  0x86   : > { %645 = vxpose.xlu1.b32.cont [14/16] (narrow) %v644_v10, 8  ;;  %409 = vmatpush.msra.mxu3 %v1104_v8 }
  0x87   : > { %389 = vmatpush.msra.mxu2 %v833_v9  ;;  %350 = vmatpush.msra.mxu0 %v814_v2  ;;  %v735_v2 = vmov 0.0  }
  0x88   : > { %608 = vxpose.xlu0.b32.cont [14/16] (narrow) %v607_v60, 8  ;;  %410 = vmatpush.msra.mxu3 %v1105_v15  ;;  %141 = vst.msk [vmem:[%s127_s27] sm:$0xff] %vm140_vm0, %v735_v2 }
  0x89   : > { %390 = vmatpush.msra.mxu2 %v1103_v14 }
  0x8e   : > { %647 = vxpose.xlu1.b32.cont [15/16] (narrow) %v646_v0, 8 }
  0x8f   : > { %v206_v31 = vld [vmem:[%s127_s27] sm:$0xff] }
  0x90   : > { %610 = vxpose.xlu0.b32.cont [15/16] (narrow) %v609_v1, 8 }
  0x96   : > { %649 = vxpose.xlu1.b32.end [16/16] (narrow) %v648_v4, 8 }
  0x98   : > { %612 = vxpose.xlu0.b32.end [16/16] (narrow) %v611_v7, 8 }
  0xc2   : > { %v650_v6 = vpop.trf.xlu1 }
  0xc3   : > { %v654_v18 = vunpack.i.h.bf16 %v650_v6  ;;  %v651_v19 = vunpack.i.l.bf16 %v650_v6 }
  0xc4   : > { %v613_v9 = vpop.trf.xlu0 }
  0xc5   : > { %v614_v20 = vunpack.i.l.bf16 %v613_v9  ;;  %v617_v13 = vunpack.i.h.bf16 %v613_v9  ;;  %371 = vmatmul.f32.vlgmr.msra.gmra.mxu1 %v654_v18  ;;  %411 = vmatmul.f32.vlgmr.msra.gmra.mxu3 %v651_v19 }
  0xc7   : > { %351 = vmatmul.f32.vlgmr.msra.gmra.mxu0 %v614_v20  ;;  %391 = vmatmul.f32.vlgmr.msra.gmra.mxu2 %v617_v13 }
 0x142   : > { %v372_v24 = vpop.f32.mrf.mxu1 }
 0x144   : > { %v352_v21 = vpop.f32.mrf.mxu0 }
 0x145   : > { %v373_v25 = vadd.f32 %v372_v24, %v352_v21 }
 0x148   : > { %v412_v27 = vpop.f32.mrf.mxu3 }
 0x14a   : > { %v392_v26 = vpop.f32.mrf.mxu2 }
 0x14b   : > { %v393_v30 = vadd.f32 %v392_v26, %v373_v25 }
 0x14d   : > { %v413_v32 = vadd.f32 %v412_v27, %v393_v30 }
 0x14f   : > { %v415_v33 = vadd.f32 %v413_v32, %v206_v31 }
 0x151   : > { %417 = vst.msk [vmem:[%s127_s27] sm:$0xff] %vm140_vm0, %v415_v33 }
 0x152   : > { %682 = shalt.err (!%p679_p5)
}
 0x153   : > { %525 = dma.vmem_to_hbm [thread:$0]  (%p786_p4), %s432_s3, 128, %s434_s4, %s419_s5  }
 0x154 PF: > { %p531_p6 = scmp.ge.s32.totalorder %s733_s11, 2  ;;  %s445_s22 = sand.u32 1, %s713_s6  }
 0x155   : > { %s446_s23 = scalar_lea.sflag [#allocation3], %s445_s22 }
 0x156   : > { %p528_p7 = pnand %p531_p6, %p793_p8 }
 0x158   : > { %p529_p9 = pneg %p528_p7 }
 0x15a   : > { %708 = dma.done.wait (%p529_p9), %s446_s23, 128  }
 0x15b   : > { %710 = vsyncadd (%p529_p9), %s446_s23, 4294967168  ;;  %s14_s11 = sadd.s32 1, %s733_s11   ;;  %s1106_s6 = smov %s717_s7 }
 0x15c   : > { %p11_p10 = scmp.ge.s32.totalorder %s14_s11, 4   ;;  %s1107_s7 = smov %s721_s8 }
 0x15d   : > { %s1108_s8 = smov %s799_s19  ;;  %s1109_s9 = smov %s729_s10 }
 0x15e   : > { %s1110_s10 = smov %s1112_s14  ;;  %13 = sbr.rel (!%p11_p10) target bundleno = 4 (0x4), region = 63 }
 0x163   :  { %452 = vsyncpa [#allocation3], 1 }
 0x164   :  { %454 = vsyncpa [#allocation3 + $0x1], 1 }

</bundles_post_ra>
